<compile_context>
chip_gen: v5e
topology: v5e:2x2
jax: 0.10.0
libtpu: 0.0.40
codegen_flags: <defaults>
</compile_context>

<pallas_src>
import jax
import jax.numpy as jnp
from jax.experimental import pallas as pl
from jax.experimental.pallas import tpu as pltpu


def _round_up(v, m):
    return (v + m - 1) // m * m


def gru_cell_kernel(x_ref, h_ref, wi_ref, wh_ref, bi_ref, bh_ref, out_ref):
    """One batch tile of a fused 3-gate GRU step.

    x_ref : (TB, Ip)     bf16
    h_ref : (TB, Hp)     f32  (cast to bf16 only for the MXU)
    wi_ref: (Ip, 3*Hp)   bf16  packed [Wiz | Wir | Wih]
    wh_ref: (Hp, 3*Hp)   bf16  packed [Whz | Whr | Whh]
    bi_ref: (1, 3*Hp)    f32   packed [biz | bir | bih]
    bh_ref: (1, 3*Hp)    f32   packed [bhz | bhr | bhh]
    out_ref:(TB, Hp)     f32
    """
    hp = out_ref.shape[1]
    h_f32 = h_ref[...]

    # Two lane-dense MXU matmuls, f32 accumulation.
    ig = jnp.dot(x_ref[...], wi_ref[...],
                 preferred_element_type=jnp.float32) + bi_ref[...]
    hg = jnp.dot(h_f32.astype(jnp.bfloat16), wh_ref[...],
                 preferred_element_type=jnp.float32) + bh_ref[...]

    # One wide sigmoid over the fused [z | r] slab, one tanh over the h slab.
    zr = jax.nn.sigmoid(ig[:, : 2 * hp] + hg[:, : 2 * hp])
    z = zr[:, :hp]
    r = zr[:, hp:]
    g = jnp.tanh(ig[:, 2 * hp:] + r * hg[:, 2 * hp:])

    out_ref[...] = ((1.0 - z) * g + z * h_f32).astype(out_ref.dtype)


def my_gru_cell(x, h_prev, params, *, batch_tile=128):
    """params: transposed weights (in_features, hidden) and biases (1, hidden)."""
    batch, in_size = x.shape
    hidden = h_prev.shape[1]

    hp = _round_up(hidden, 128)          # lane-dense gate / output width
    ip = _round_up(in_size, 128)         # lane-dense contraction dim
    tb = min(batch_tile, _round_up(batch, 8))
    bp = _round_up(batch, tb)

    def pad2(a, rows, cols, dtype):
        return jnp.pad(a, ((0, rows - a.shape[0]),
                           (0, cols - a.shape[1]))).astype(dtype)

    # Pack + pad gate weights/biases offline (slab order: z | r | h).
    wi = jnp.concatenate(
        [pad2(params["Wiz"], ip, hp, jnp.bfloat16),
         pad2(params["Wir"], ip, hp, jnp.bfloat16),
         pad2(params["Wih"], ip, hp, jnp.bfloat16)], axis=1)
    wh = jnp.concatenate(
        [pad2(params["Whz"], hp, hp, jnp.bfloat16),
         pad2(params["Whr"], hp, hp, jnp.bfloat16),
         pad2(params["Whh"], hp, hp, jnp.bfloat16)], axis=1)
    bi = jnp.concatenate(
        [pad2(params["biz"], 1, hp, jnp.float32),
         pad2(params["bir"], 1, hp, jnp.float32),
         pad2(params["bih"], 1, hp, jnp.float32)], axis=1)
    bh = jnp.concatenate(
        [pad2(params["bhz"], 1, hp, jnp.float32),
         pad2(params["bhr"], 1, hp, jnp.float32),
         pad2(params["bhh"], 1, hp, jnp.float32)], axis=1)

    x_p = pad2(x, bp, ip, jnp.bfloat16)          # matmul-only -> bf16 at boundary
    h_p = pad2(h_prev, bp, hp, jnp.float32)      # kept f32 for exact z*h blend

    resident = lambda b: (0, 0)                  # constant block -> stays in VMEM

    flops = 2 * bp * (ip + hp) * 3 * hp
    bytes_accessed = (x_p.size * 2 + h_p.size * 4 + wi.size * 2 + wh.size * 2
                      + (bi.size + bh.size) * 4 + bp * hp * 4)
    cost = pl.CostEstimate(flops=flops,
                           transcendentals=3 * bp * hp,
                           bytes_accessed=bytes_accessed)

    out = pl.pallas_call(
        gru_cell_kernel,
        out_shape=jax.ShapeDtypeStruct((bp, hp), jnp.float32),
        grid_spec=pltpu.PrefetchScalarGridSpec(
            num_scalar_prefetch=0,
            grid=(bp // tb,),
            in_specs=[
                pl.BlockSpec((tb, ip), lambda b: (b, 0)),       # x tile
                pl.BlockSpec((tb, hp), lambda b: (b, 0)),       # h tile
                pl.BlockSpec((ip, 3 * hp), resident),           # Wi (resident)
                pl.BlockSpec((hp, 3 * hp), resident),           # Wh (resident)
                pl.BlockSpec((1, 3 * hp), resident),            # bi
                pl.BlockSpec((1, 3 * hp), resident),            # bh
            ],
            out_specs=pl.BlockSpec((tb, hp), lambda b: (b, 0)),
        ),
        compiler_params=pltpu.CompilerParams(
            dimension_semantics=("parallel",)),
        cost_estimate=cost,
    )(x_p, h_p, wi, wh, bi, bh)

    return out[:batch, :hidden].astype(x.dtype)


def _reference(x, h_prev, params):
    """Pure-JAX f32 reference matching the PyTorch forward."""
    iz = x @ params["Wiz"] + params["biz"]
    ir = x @ params["Wir"] + params["bir"]
    ih = x @ params["Wih"] + params["bih"]
    hz = h_prev @ params["Whz"] + params["bhz"]
    hr = h_prev @ params["Whr"] + params["bhr"]
    hh = h_prev @ params["Whh"] + params["bhh"]
    z = jax.nn.sigmoid(iz + hz)
    r = jax.nn.sigmoid(ir + hr)
    g = jnp.tanh(ih + r * hh)
    return (1.0 - z) * g + z * h_prev


def init_params(key, input_size, hidden_size, dtype=jnp.float32):
    ks = jax.random.split(key, 12)

    def lin_w(k, fan_in):
        bound = 1.0 / jnp.sqrt(fan_in)
        # stored transposed relative to nn.Linear: (in_features, hidden_size)
        return jax.random.uniform(k, (fan_in, hidden_size), dtype, -bound, bound)

    def lin_b(k, fan_in):
        bound = 1.0 / jnp.sqrt(fan_in)
        return jax.random.uniform(k, (1, hidden_size), dtype, -bound, bound)

    return {
        "Wiz": lin_w(ks[0], input_size),  "biz": lin_b(ks[1], input_size),
        "Wir": lin_w(ks[2], input_size),  "bir": lin_b(ks[3], input_size),
        "Wih": lin_w(ks[4], input_size),  "bih": lin_b(ks[5], input_size),
        "Whz": lin_w(ks[6], hidden_size), "bhz": lin_b(ks[7], hidden_size),
        "Whr": lin_w(ks[8], hidden_size), "bhr": lin_b(ks[9], hidden_size),
        "Whh": lin_w(ks[10], hidden_size), "bhh": lin_b(ks[11], hidden_size),
    }


if __name__ == "__main__":
    key = jax.random.PRNGKey(0)
    k_x, k_h, k_p = jax.random.split(key, 3)

    batch, input_size, hidden_size = 4, 16, 32
    x = jax.random.normal(k_x, (batch, input_size), jnp.float32)
    h_prev = jax.random.normal(k_h, (batch, hidden_size), jnp.float32)
    params = init_params(k_p, input_size, hidden_size)

    h_new = jax.block_until_ready(my_gru_cell(x, h_prev, params))

    ref = _reference(x, h_prev, params)
    assert h_new.shape == (batch, hidden_size)
    # bf16 matmul inputs (f32 accumulate) vs f32 reference -> modest tolerance.
    assert jnp.allclose(h_new, ref, atol=2e-2, rtol=2e-2), float(
        jnp.max(jnp.abs(h_new - ref)))

    print("KERNEL_OK")
</pallas_src>

<mosaic_0001>
module attributes {stable_mosaic.version = 11 : i64} {
  func.func @gru_cell_kernel(%arg0: i32, %arg1: memref<8x128xbf16, #tpu.memory_space<vmem>>, %arg2: memref<8x128xf32, #tpu.memory_space<vmem>>, %arg3: memref<128x384xbf16, #tpu.memory_space<vmem>>, %arg4: memref<128x384xbf16, #tpu.memory_space<vmem>>, %arg5: memref<1x384xf32, #tpu.memory_space<vmem>>, %arg6: memref<1x384xf32, #tpu.memory_space<vmem>>, %arg7: memref<8x128xf32, #tpu.memory_space<vmem>>) attributes {dimension_semantics = [#tpu.dimension_semantics<parallel>], iteration_bounds = array<i64: 1>, scalar_prefetch = 0 : i64, scratch_operands = 0 : i64, tpu.core_type = #tpu.core_type<tc>, window_params = [{transform_indices = @transform_0, window_bounds = array<i64: 8, 128>}, {transform_indices = @transform_1, window_bounds = array<i64: 8, 128>}, {pipeline_mode = #tpu.pipeline_mode<synchronous>, transform_indices = @transform_2, window_bounds = array<i64: 128, 384>}, {pipeline_mode = #tpu.pipeline_mode<synchronous>, transform_indices = @transform_3, window_bounds = array<i64: 128, 384>}, {pipeline_mode = #tpu.pipeline_mode<synchronous>, transform_indices = @transform_4, window_bounds = array<i64: 1, 384>}, {pipeline_mode = #tpu.pipeline_mode<synchronous>, transform_indices = @transform_5, window_bounds = array<i64: 1, 384>}, {transform_indices = @transform_6, window_bounds = array<i64: 8, 128>}]} {
    %c0 = arith.constant 0 : index
    %c0_0 = arith.constant 0 : index
    %0 = vector.load %arg2[%c0, %c0_0] : memref<8x128xf32, #tpu.memory_space<vmem>>, vector<8x128xf32>
    %c0_1 = arith.constant 0 : index
    %c0_2 = arith.constant 0 : index
    %1 = vector.load %arg1[%c0_1, %c0_2] : memref<8x128xbf16, #tpu.memory_space<vmem>>, vector<8x128xbf16>
    %c0_3 = arith.constant 0 : index
    %c0_4 = arith.constant 0 : index
    %2 = vector.load %arg3[%c0_3, %c0_4] : memref<128x384xbf16, #tpu.memory_space<vmem>>, vector<128x384xbf16>
    %cst = arith.constant dense<0.000000e+00> : vector<8x384xf32>
    %3 = tpu.matmul %1, %2, %cst {dimension_numbers = #tpu.dot_dimension_numbers<[1], [0], [0], [1], [0, 0, 1, 1], [], []>} : vector<8x128xbf16>, vector<128x384xbf16>, vector<8x384xf32> -> vector<8x384xf32>
    %c0_5 = arith.constant 0 : index
    %c0_6 = arith.constant 0 : index
    %4 = vector.load %arg5[%c0_5, %c0_6] : memref<1x384xf32, #tpu.memory_space<vmem>>, vector<1x384xf32>
    %5 = vector.broadcast %4 : vector<1x384xf32> to vector<8x384xf32>
    %6 = arith.addf %3, %5 : vector<8x384xf32>
    %7 = arith.truncf %0 : vector<8x128xf32> to vector<8x128xbf16>
    %c0_7 = arith.constant 0 : index
    %c0_8 = arith.constant 0 : index
    %8 = vector.load %arg4[%c0_7, %c0_8] : memref<128x384xbf16, #tpu.memory_space<vmem>>, vector<128x384xbf16>
    %cst_9 = arith.constant dense<0.000000e+00> : vector<8x384xf32>
    %9 = tpu.matmul %7, %8, %cst_9 {dimension_numbers = #tpu.dot_dimension_numbers<[1], [0], [0], [1], [0, 0, 1, 1], [], []>} : vector<8x128xbf16>, vector<128x384xbf16>, vector<8x384xf32> -> vector<8x384xf32>
    %c0_10 = arith.constant 0 : index
    %c0_11 = arith.constant 0 : index
    %10 = vector.load %arg6[%c0_10, %c0_11] : memref<1x384xf32, #tpu.memory_space<vmem>>, vector<1x384xf32>
    %11 = vector.broadcast %10 : vector<1x384xf32> to vector<8x384xf32>
    %12 = arith.addf %9, %11 : vector<8x384xf32>
    %13 = vector.extract_strided_slice %6 {offsets = [0, 0], sizes = [8, 256], strides = [1, 1]} : vector<8x384xf32> to vector<8x256xf32>
    %14 = vector.extract_strided_slice %12 {offsets = [0, 0], sizes = [8, 256], strides = [1, 1]} : vector<8x384xf32> to vector<8x256xf32>
    %15 = arith.addf %13, %14 : vector<8x256xf32>
    %16 = arith.negf %15 : vector<8x256xf32>
    %17 = math.exp %16 : vector<8x256xf32>
    %cst_12 = arith.constant 1.000000e+00 : f32
    %18 = vector.broadcast %cst_12 : f32 to vector<8x256xf32>
    %19 = arith.addf %18, %17 : vector<8x256xf32>
    %20 = arith.divf %18, %19 : vector<8x256xf32>
    %21 = vector.extract_strided_slice %20 {offsets = [0, 0], sizes = [8, 128], strides = [1, 1]} : vector<8x256xf32> to vector<8x128xf32>
    %22 = vector.extract_strided_slice %20 {offsets = [0, 128], sizes = [8, 128], strides = [1, 1]} : vector<8x256xf32> to vector<8x128xf32>
    %23 = vector.extract_strided_slice %6 {offsets = [0, 256], sizes = [8, 128], strides = [1, 1]} : vector<8x384xf32> to vector<8x128xf32>
    %24 = vector.extract_strided_slice %12 {offsets = [0, 256], sizes = [8, 128], strides = [1, 1]} : vector<8x384xf32> to vector<8x128xf32>
    %25 = arith.mulf %22, %24 : vector<8x128xf32>
    %26 = arith.addf %23, %25 : vector<8x128xf32>
    %27 = math.tanh %26 : vector<8x128xf32>
    %cst_13 = arith.constant 1.000000e+00 : f32
    %28 = vector.broadcast %cst_13 : f32 to vector<8x128xf32>
    %29 = arith.subf %28, %21 : vector<8x128xf32>
    %30 = arith.mulf %29, %27 : vector<8x128xf32>
    %31 = arith.mulf %21, %0 : vector<8x128xf32>
    %32 = arith.addf %30, %31 : vector<8x128xf32>
    %c0_14 = arith.constant 0 : index
    %c0_15 = arith.constant 0 : index
    %33 = vector.load %arg7[%c0_14, %c0_15] : memref<8x128xf32, #tpu.memory_space<vmem>>, vector<8x128xf32>
    tpu.vector_store %arg7[%c0_14, %c0_15], %32 {strides = array<i32>} : memref<8x128xf32, #tpu.memory_space<vmem>>, vector<8x128xf32>,
    return
  }
  func.func @transform_0(%arg0: i32) -> (i32, i32) {
    %c0_i32 = arith.constant 0 : i32
    %c0_i32_0 = arith.constant 0 : i32
    return %arg0, %c0_i32 : i32, i32
  }
  func.func @transform_1(%arg0: i32) -> (i32, i32) {
    %c0_i32 = arith.constant 0 : i32
    %c0_i32_0 = arith.constant 0 : i32
    return %arg0, %c0_i32 : i32, i32
  }
  func.func @transform_2(%arg0: i32) -> (i32, i32) {
    %c0_i32 = arith.constant 0 : i32
    %c0_i32_0 = arith.constant 0 : i32
    %c0_i32_1 = arith.constant 0 : i32
    return %c0_i32, %c0_i32_0 : i32, i32
  }
  func.func @transform_3(%arg0: i32) -> (i32, i32) {
    %c0_i32 = arith.constant 0 : i32
    %c0_i32_0 = arith.constant 0 : i32
    %c0_i32_1 = arith.constant 0 : i32
    return %c0_i32, %c0_i32_0 : i32, i32
  }
  func.func @transform_4(%arg0: i32) -> (i32, i32) {
    %c0_i32 = arith.constant 0 : i32
    %c0_i32_0 = arith.constant 0 : i32
    %c0_i32_1 = arith.constant 0 : i32
    return %c0_i32, %c0_i32_0 : i32, i32
  }
  func.func @transform_5(%arg0: i32) -> (i32, i32) {
    %c0_i32 = arith.constant 0 : i32
    %c0_i32_0 = arith.constant 0 : i32
    %c0_i32_1 = arith.constant 0 : i32
    return %c0_i32, %c0_i32_0 : i32, i32
  }
  func.func @transform_6(%arg0: i32) -> (i32, i32) {
    %c0_i32 = arith.constant 0 : i32
    %c0_i32_0 = arith.constant 0 : i32
    return %arg0, %c0_i32 : i32, i32
  }
}

</mosaic_0001>

<bundles_post_ra>
// kernel: tpu_custom_call.1
= control target key start
LH: loop header
LB: loop body
LE: loop exit
PB: predicated region body
PF: predicated region fallthrough
CT: control target
= control target key end

     0   :  { %11 = vsyncpa [#allocation3], 0  ;;  %s1071_s0 = inlined_call_operand.hbm [shape: bf16[8,128], index: 0, kind: input, shape index: {}]   ;;  %s1072_s1 = inlined_call_operand.hbm [shape: f32[8,128], index: 1, kind: input, shape index: {}]   ;;  %s1073_s2 = inlined_call_operand.hbm [shape: bf16[128,384], index: 2, kind: input, shape index: {}]   ;;  %s1074_s3 = inlined_call_operand.hbm [shape: bf16[128,384], index: 3, kind: input, shape index: {}]   ;;  %s1075_s4 = inlined_call_operand.vmem [shape: f32[1,384], index: 4, kind: input, shape index: {}]   ;;  %s1076_s5 = inlined_call_operand.hbm [shape: f32[1,384], index: 5, kind: input, shape index: {}]   ;;  %s1077_s6 = inlined_call_operand.hbm [shape: f32[8,128], index: 6, kind: output, shape index: {}]  }
   0x1   :  { %12 = vsyncpa [#allocation6], 0 }
   0x2   :  { %13 = vsyncpa [#allocation9], 0  ;;  %s31_s23 = sshll.u32 %s1072_s1, 4  ;;  %s32_s23 = int_to_ptr.hbm [resolvable:$true] %s31_s23 }
   0x3   :  { %14 = vsyncpa [#allocation4], 0  ;;  %s992_s24 = smov [#allocation5]   ;;  %s54_s28 = sshll.u32 %s1074_s3, 4  ;;  %s55_s28 = int_to_ptr.hbm [resolvable:$true] %s54_s28 }
   0x4   :  { %s33_s25 = sshll.u32 %s992_s24, 4  ;;  %s993_s29 = smov [#allocation8]   ;;  %s34_s25 = int_to_ptr.vmem [resolvable:$true] %s33_s25 }
   0x5   :  { %36 = dma.hbm_to_vmem [thread:$0]  %s32_s23, 128, %s34_s25, [#allocation6]  }
   0x6   :  { %s56_s30 = sshll.u32 %s993_s29, 4  ;;  %s20_s9 = sshll.u32 %s1071_s0, 4  ;;  %s57_s30 = int_to_ptr.vmem [resolvable:$true] %s56_s30  ;;  %s21_s9 = int_to_ptr.hbm [resolvable:$true] %s20_s9 }
   0x7   :  { %s994_s1 = smov 192   ;;  %s995_s10 = smov 12  }
   0x8   :  { %62 = dma.hbm_to_vmem [thread:$0]  %s55_s28, 3072, %s57_s30, [#allocation9], %s994_s1, %s994_s1, %s995_s10  }
   0x9   :  { %s41_s13 = sshll.u32 %s1073_s2, 4  ;;  %s996_s14 = smov [#allocation2]   ;;  %s42_s13 = int_to_ptr.hbm [resolvable:$true] %s41_s13 }
   0xa   :  { %s22_s15 = sshll.u32 %s996_s14, 4  ;;  %s997_s3 = smov [#allocation7]   ;;  %s23_s15 = int_to_ptr.vmem [resolvable:$true] %s22_s15 }
   0xb   :  { %25 = dma.hbm_to_vmem [thread:$0]  %s21_s9, 64, %s23_s15, [#allocation3]  }
   0xc   :  { %s43_s16 = sshll.u32 %s997_s3, 4  ;;  %s70_s0 = sshll.u32 %s1076_s5, 4  ;;  %s44_s16 = int_to_ptr.vmem [resolvable:$true] %s43_s16  ;;  %s71_s0 = int_to_ptr.hbm [resolvable:$true] %s70_s0 }
   0xd   :  { %49 = dma.hbm_to_vmem [thread:$0]  %s42_s13, 3072, %s44_s16, [#allocation6], %s994_s1, %s994_s1, %s995_s10  }
   0xe   :  { %s998_s19 = smov [#allocation10]  }
   0xf   :  { %s72_s20 = sshll.u32 %s998_s19, 4  ;;  %s73_s20 = int_to_ptr.vmem [resolvable:$true] %s72_s20 }
  0x10   :  { %75 = dma.hbm_to_vmem [thread:$0]  %s71_s0, 48, %s73_s20, [#allocation9]  }
  0x11   :  { %984 = dma.done.wait [#allocation3], 64  }
  0x12   :  { %985 = vsyncadd [#allocation3], 4294967232 }
  0x13   :  { %986 = dma.done.wait [#allocation6], 3200  }
  0x14   :  { %987 = vsyncadd [#allocation6], 4294964096 }
  0x15   :  { %988 = dma.done.wait [#allocation9], 3120  }
  0x16   :  { %989 = vsyncadd [#allocation9], 4294964176  ;;  %v666_v0 = vld [vmem:[#allocation7 + $0xa8] sm:$0xf]  ;;  %v796_v1 = vld [vmem:[#allocation7 + $0xb0] sm:$0xf0] }
  0x17   :  { %v762_v2 = vld [vmem:[#allocation8 + $0xa8] sm:$0xf]  ;;  %v667_v3 = vor.u32 %v796_v1, %v666_v0  ;;  %v820_v4 = vld [vmem:[#allocation8 + $0xb0] sm:$0xf0]  ;;  %v654_v5 = vld [vmem:[#allocation7 + $0x90] sm:$0xf] }
  0x18   :  { %v793_v6 = vld [vmem:[#allocation7 + $0x98] sm:$0xf0]  ;;  %v763_v7 = vor.u32 %v820_v4, %v762_v2  ;;  %v750_v8 = vld [vmem:[#allocation8 + $0x90] sm:$0xf]  ;;  %v642_v12 = vld [vmem:[#allocation7 + $0x78] sm:$0xf] }
  0x19   :  { %v817_v9 = vld [vmem:[#allocation8 + $0x98] sm:$0xf0]  ;;  %266 = vmatpush.bf16.msra.mxu0 %v667_v3  ;;  %v655_v10 = vor.u32 %v793_v6, %v654_v5  ;;  %v790_v13 = vld [vmem:[#allocation7 + $0x80] sm:$0xf0]  ;;  %v738_v14 = vld [vmem:[#allocation8 + $0x78] sm:$0xf] }
  0x1a   :  { %474 = vmatpush.bf16.msra.mxu3 %v763_v7  ;;  %v751_v11 = vor.u32 %v817_v9, %v750_v8  ;;  %v814_v15 = vld [vmem:[#allocation8 + $0x80] sm:$0xf0]  ;;  %v643_v16 = vor.u32 %v790_v13, %v642_v12  ;;  %v630_v17 = vld [vmem:[#allocation7 + $0x60] sm:$0xf]  ;;  %v787_v19 = vld [vmem:[#allocation7 + $0x68] sm:$0xf0] }
  0x1b   :  { %v739_v18 = vor.u32 %v814_v15, %v738_v14  ;;  %v795_v20 = vld [vmem:[#allocation7 + $0xac] sm:$0xf]  ;;  %v668_v21 = vld [vmem:[#allocation7 + $0xb4] sm:$0xf0]  ;;  %v726_v22 = vld [vmem:[#allocation8 + $0x60] sm:$0xf]  ;;  %v631_v27 = vor.u32 %v787_v19, %v630_v17 }
  0x1c   :  { %v811_v23 = vld [vmem:[#allocation8 + $0x68] sm:$0xf0]  ;;  %v671_v24 = vor.u32 %v795_v20, %v668_v21  ;;  %v792_v25 = vld [vmem:[#allocation7 + $0x94] sm:$0xf]  ;;  %v656_v26 = vld [vmem:[#allocation7 + $0x9c] sm:$0xf0] }
  0x1d   :  { %267 = vmatpush.bf16.msra.mxu0 %v655_v10  ;;  %v618_v28 = vld [vmem:[#allocation7 + $0x48] sm:$0xf]  ;;  %v659_v29 = vor.u32 %v792_v25, %v656_v26  ;;  %v727_v30 = vor.u32 %v811_v23, %v726_v22  ;;  %v784_v31 = vld [vmem:[#allocation7 + $0x50] sm:$0xf0]  ;;  %v789_v32 = vld [vmem:[#allocation7 + $0x7c] sm:$0xf] }
  0x1e   :  { %475 = vmatpush.bf16.msra.mxu3 %v751_v11  ;;  %279 = vmatpush.bf16.msra.mxu1 %v671_v24  ;;  %v644_v33 = vld [vmem:[#allocation7 + $0x84] sm:$0xf0]  ;;  %v808_v35 = vld [vmem:[#allocation8 + $0x50] sm:$0xf0]  ;;  %v619_v36 = vor.u32 %v784_v31, %v618_v28  ;;  %v606_v37 = vld [vmem:[#allocation7 + $0x30] sm:$0xf] }
  0x1f   :  { %v714_v34 = vld [vmem:[#allocation8 + $0x48] sm:$0xf]  ;;  %v647_v38 = vor.u32 %v789_v32, %v644_v33  ;;  %v781_v40 = vld [vmem:[#allocation7 + $0x38] sm:$0xf0]  ;;  %v786_v41 = vld [vmem:[#allocation7 + $0x64] sm:$0xf] }
  0x20   :  { %v715_v39 = vor.u32 %v808_v35, %v714_v34  ;;  %v632_v42 = vld [vmem:[#allocation7 + $0x6c] sm:$0xf0]  ;;  %v805_v44 = vld [vmem:[#allocation8 + $0x38] sm:$0xf0]  ;;  %v594_v45 = vld [vmem:[#allocation7 + $0x18] sm:$0xf]  ;;  %v607_v46 = vor.u32 %v781_v40, %v606_v37 }
  0x21   :  { %268 = vmatpush.bf16.msra.mxu0 %v643_v16  ;;  %v702_v43 = vld [vmem:[#allocation8 + $0x30] sm:$0xf]  ;;  %v778_v47 = vld [vmem:[#allocation7 + $0x20] sm:$0xf0]  ;;  %v635_v48 = vor.u32 %v786_v41, %v632_v42  ;;  %v797_v50 = vld [vmem:[#allocation7 + $0xb8] sm:$0xf0] }
  0x22   :  { %476 = vmatpush.bf16.msra.mxu3 %v739_v18  ;;  %280 = vmatpush.bf16.msra.mxu1 %v659_v29  ;;  %v674_v49 = vld [vmem:[#allocation7 + $0xb0] sm:$0xf]  ;;  %v703_v51 = vor.u32 %v805_v44, %v702_v43  ;;  %v690_v52 = vld [vmem:[#allocation8 + $0x18] sm:$0xf]  ;;  %v783_v53 = vld [vmem:[#allocation7 + $0x4c] sm:$0xf]  ;;  %v595_v61 = vor.u32 %v778_v47, %v594_v45 }
  0x23   :  { %v620_v54 = vld [vmem:[#allocation7 + $0x54] sm:$0xf0]  ;;  %v675_v55 = vor.u32 %v797_v50, %v674_v49  ;;  %v802_v56 = vld [vmem:[#allocation8 + $0x20] sm:$0xf0]  ;;  %v582_v59 = vld [vmem:[#allocation7] sm:$0xf] }
  0x24   :  { %v662_v57 = vld [vmem:[#allocation7 + $0x98] sm:$0xf]  ;;  %v794_v58 = vld [vmem:[#allocation7 + $0xa0] sm:$0xf0]  ;;  %v775_v62 = vld [vmem:[#allocation7 + $0x8] sm:$0xf0]  ;;  %v623_v0 = vor.u32 %v783_v53, %v620_v54  ;;  %v691_v2 = vor.u32 %v802_v56, %v690_v52 }
  0x25   :  { %269 = vmatpush.bf16.msra.mxu0 %v631_v27  ;;  %292 = vmatpush.bf16.msra.mxu2 %v675_v55  ;;  %v663_v60 = vor.u32 %v794_v58, %v662_v57  ;;  %v678_v63 = vld [vmem:[#allocation8] sm:$0xf]  ;;  %v780_v1 = vld [vmem:[#allocation7 + $0x34] sm:$0xf]  ;;  %v791_v5 = vld [vmem:[#allocation7 + $0x88] sm:$0xf0]  ;;  %v583_v10 = vor.u32 %v775_v62, %v582_v59 }
  0x26   :  { %477 = vmatpush.bf16.msra.mxu3 %v727_v30  ;;  %281 = vmatpush.bf16.msra.mxu1 %v647_v38  ;;  %v608_v3 = vld [vmem:[#allocation7 + $0x3c] sm:$0xf0]  ;;  %v799_v6 = vld [vmem:[#allocation8 + $0x8] sm:$0xf0]  ;;  %v764_v8 = vld [vmem:[#allocation8 + $0xb4] sm:$0xf0] }
  0x27   :  { %v650_v4 = vld [vmem:[#allocation7 + $0x80] sm:$0xf]  ;;  %v819_v7 = vld [vmem:[#allocation8 + $0xac] sm:$0xf]  ;;  %v1050_v11 = vld [vmem:[#allocation5] sm:$0xff]  ;;  %v611_v12 = vor.u32 %v780_v1, %v608_v3  ;;  %v679_v14 = vor.u32 %v799_v6, %v678_v63  ;;  %s568_s24 = sshll.u32 %s1077_s6, 4  ;;  %s569_s24 = int_to_ptr.hbm [resolvable:$true] %s568_s24 }
  0x28   :  { %v651_v9 = vor.u32 %v791_v5, %v650_v4  ;;  %v777_v13 = vld [vmem:[#allocation7 + $0x1c] sm:$0xf]  ;;  %v767_v15 = vor.u32 %v819_v7, %v764_v8  ;;  %v596_v16 = vld [vmem:[#allocation7 + $0x24] sm:$0xf0]  ;;  %v788_v18 = vld [vmem:[#allocation7 + $0x70] sm:$0xf0]  ;;  %v1054_v22 = vpack.c.bf16 %v1050_v11, %v1050_v11 }
  0x29   :  { %270 = vmatpush.bf16.msra.mxu0 %v619_v36  ;;  %293 = vmatpush.bf16.msra.mxu2 %v663_v60  ;;  %v638_v17 = vld [vmem:[#allocation7 + $0x68] sm:$0xf]  ;;  %v816_v19 = vld [vmem:[#allocation8 + $0x94] sm:$0xf]  ;;  %v752_v20 = vld [vmem:[#allocation8 + $0x9c] sm:$0xf0]  ;;  %v599_v24 = vor.u32 %v777_v13, %v596_v16 }
  0x2a   :  { %478 = vmatpush.bf16.msra.mxu3 %v715_v39  ;;  %282 = vmatpush.bf16.msra.mxu1 %v635_v48  ;;  %v639_v21 = vor.u32 %v788_v18, %v638_v17  ;;  %v1056_v23 = vld [vmem:[#allocation2] sm:$0xf]  ;;  %v626_v25 = vld [vmem:[#allocation7 + $0x50] sm:$0xf]  ;;  %v785_v26 = vld [vmem:[#allocation7 + $0x58] sm:$0xf0]  ;;  %v755_v27 = vor.u32 %v816_v19, %v752_v20 }
  0x2b   :  { %v813_v28 = vld [vmem:[#allocation8 + $0x7c] sm:$0xf]  ;;  %v774_v29 = vld [vmem:[#allocation7 + $0x4] sm:$0xf]  ;;  %v584_v30 = vld [vmem:[#allocation7 + $0xc] sm:$0xf0]  ;;  %v627_v34 = vor.u32 %v785_v26, %v626_v25 }
  0x2c   :  { %v740_v31 = vld [vmem:[#allocation8 + $0x84] sm:$0xf0]  ;;  %v770_v32 = vld [vmem:[#allocation8 + $0xb0] sm:$0xf]  ;;  %v821_v33 = vld [vmem:[#allocation8 + $0xb8] sm:$0xf0]  ;;  %v587_v35 = vor.u32 %v774_v29, %v584_v30 }
  0x2d   :  { %271 = vmatpush.bf16.msra.mxu0 %v607_v46  ;;  %294 = vmatpush.bf16.msra.mxu2 %v651_v9  ;;  %v614_v36 = vld [vmem:[#allocation7 + $0x38] sm:$0xf]  ;;  %v782_v37 = vld [vmem:[#allocation7 + $0x40] sm:$0xf0]  ;;  %v743_v38 = vor.u32 %v813_v28, %v740_v31  ;;  %v771_v40 = vor.u32 %v821_v33, %v770_v32  ;;  %v728_v41 = vld [vmem:[#allocation8 + $0x6c] sm:$0xf0] }
  0x2e   :  { %479 = vmatpush.bf16.msra.mxu3 %v703_v51  ;;  %283 = vmatpush.bf16.msra.mxu1 %v623_v0  ;;  %v810_v39 = vld [vmem:[#allocation8 + $0x64] sm:$0xf]  ;;  %v758_v42 = vld [vmem:[#allocation8 + $0x98] sm:$0xf]  ;;  %v615_v44 = vor.u32 %v782_v37, %v614_v36  ;;  %v602_v45 = vld [vmem:[#allocation7 + $0x20] sm:$0xf] }
  0x2f   :  { %v818_v43 = vld [vmem:[#allocation8 + $0xa0] sm:$0xf0]  ;;  %v779_v46 = vld [vmem:[#allocation7 + $0x28] sm:$0xf0]  ;;  %v731_v47 = vor.u32 %v810_v39, %v728_v41  ;;  %v716_v50 = vld [vmem:[#allocation8 + $0x54] sm:$0xf0] }
  0x30   :  { %v807_v48 = vld [vmem:[#allocation8 + $0x4c] sm:$0xf]  ;;  %v759_v49 = vor.u32 %v818_v43, %v758_v42  ;;  %v746_v51 = vld [vmem:[#allocation8 + $0x80] sm:$0xf]  ;;  %v603_v53 = vor.u32 %v779_v46, %v602_v45  ;;  %v590_v54 = vld [vmem:[#allocation7 + $0x8] sm:$0xf] }
  0x31   :  { %272 = vmatpush.bf16.msra.mxu0 %v595_v61  ;;  %295 = vmatpush.bf16.msra.mxu2 %v639_v21  ;;  %v815_v52 = vld [vmem:[#allocation8 + $0x88] sm:$0xf0]  ;;  %v776_v55 = vld [vmem:[#allocation7 + $0x10] sm:$0xf0]  ;;  %v719_v56 = vor.u32 %v807_v48, %v716_v50  ;;  %v704_v59 = vld [vmem:[#allocation8 + $0x3c] sm:$0xf0] }
  0x32   :  { %480 = vmatpush.bf16.msra.mxu3 %v691_v2  ;;  %284 = vmatpush.bf16.msra.mxu1 %v611_v12  ;;  %v804_v57 = vld [vmem:[#allocation8 + $0x34] sm:$0xf]  ;;  %v747_v58 = vor.u32 %v815_v52, %v746_v51  ;;  %v734_v60 = vld [vmem:[#allocation8 + $0x68] sm:$0xf]  ;;  %v591_v62 = vor.u32 %v776_v55, %v590_v54  ;;  %v801_v0 = vld [vmem:[#allocation8 + $0x1c] sm:$0xf] }
  0x33   :  { %v812_v61 = vld [vmem:[#allocation8 + $0x70] sm:$0xf0]  ;;  %v707_v63 = vor.u32 %v804_v57, %v704_v59  ;;  %v692_v2 = vld [vmem:[#allocation8 + $0x24] sm:$0xf0]  ;;  %v722_v3 = vld [vmem:[#allocation8 + $0x50] sm:$0xf] }
  0x34   :  { %v735_v1 = vor.u32 %v812_v61, %v734_v60  ;;  %v809_v4 = vld [vmem:[#allocation8 + $0x58] sm:$0xf0]  ;;  %v695_v5 = vor.u32 %v801_v0, %v692_v2  ;;  %v798_v6 = vld [vmem:[#allocation8 + $0x4] sm:$0xf]  ;;  %v680_v8 = vld [vmem:[#allocation8 + $0xc] sm:$0xf0] }
  0x35   :  { %273 = vmatpush.bf16.msra.mxu0 %v583_v10  ;;  %296 = vmatpush.bf16.msra.mxu2 %v627_v34  ;;  %v723_v7 = vor.u32 %v809_v4, %v722_v3  ;;  %v710_v9 = vld [vmem:[#allocation8 + $0x38] sm:$0xf]  ;;  %v806_v10 = vld [vmem:[#allocation8 + $0x40] sm:$0xf0]  ;;  %v683_v12 = vor.u32 %v798_v6, %v680_v8  ;;  %v686_v17 = vld [vmem:[#allocation8 + $0x8] sm:$0xf] }
  0x36   :  { %481 = vmatpush.bf16.msra.mxu3 %v679_v14  ;;  %285 = vmatpush.bf16.msra.mxu1 %v599_v24  ;;  %v711_v13 = vor.u32 %v806_v10, %v710_v9  ;;  %v698_v14 = vld [vmem:[#allocation8 + $0x20] sm:$0xf]  ;;  %v800_v18 = vld [vmem:[#allocation8 + $0x10] sm:$0xf0] }
  0x37   :  { %v687_v19 = vor.u32 %v800_v18, %v686_v17  ;;  %v338_v24 = vld [vmem:[#allocation10] sm:$0x7] }
  0x38   :  { %274 = vmatmul.bf16.vlgmr.msra.gmra.mxu0 %v1056_v23  ;;  %v340_v28 = vperm.slane %v338_v24, 0  ;;  %v342_v55 = vperm.slane %v338_v24, 2 }
  0x39   :  { %487 = vmatpush.bf16.msrb.mxu0 %v767_v15  ;;  %482 = vmatmul.bf16.vlgmr.msra.gmra.mxu3 %v1054_v22  ;;  %v803_v15 = vld [vmem:[#allocation8 + $0x28] sm:$0xf0] }
  0x3a   :  { %286 = vmatpush.bf16.msra.mxu1 %v587_v35  ;;  %297 = vmatpush.bf16.msra.mxu2 %v615_v44  ;;  %v699_v16 = vor.u32 %v803_v15, %v698_v14 }
  0x3d   :  { %488 = vmatpush.bf16.msrb.mxu0 %v755_v27  ;;  %287 = vmatmul.bf16.vlgmr.msra.gmra.mxu1 %v1056_v23 }
  0x3e   :  { %500 = vmatpush.bf16.msrb.mxu1 %v771_v40  ;;  %298 = vmatpush.bf16.msra.mxu2 %v603_v53 }
  0x41   :  { %489 = vmatpush.bf16.msrb.mxu0 %v743_v38 }
  0x42   :  { %501 = vmatpush.bf16.msrb.mxu1 %v759_v49  ;;  %299 = vmatpush.bf16.msra.mxu2 %v591_v62 }
  0x45   :  { %490 = vmatpush.bf16.msrb.mxu0 %v731_v47  ;;  %300 = vmatmul.bf16.vlgmr.msra.gmra.mxu2 %v1056_v23  ;;  %v130_v23 = vld [vmem:[%s1075_s4] sm:$0x7]  ;;  %s999_s4 = smov [#allocation11]  }
  0x46   :  { %502 = vmatpush.bf16.msrb.mxu1 %v747_v58  ;;  %v132_v27 = vperm.slane %v130_v23, 0  ;;  %v133_v35 = vperm.slane %v130_v23, 1  ;;  %v134_v60 = vperm.slane %v130_v23, 2  ;;  %s566_s21 = sshll.u32 %s999_s4, 4  ;;  %s567_s21 = int_to_ptr.vmem [resolvable:$true] %s566_s21 }
  0x49   :  { %491 = vmatpush.bf16.msrb.mxu0 %v719_v56 }
  0x4a   :  { %503 = vmatpush.bf16.msrb.mxu1 %v735_v1 }
  0x4d   :  { %492 = vmatpush.bf16.msrb.mxu0 %v707_v63 }
  0x4e   :  { %504 = vmatpush.bf16.msrb.mxu1 %v723_v7 }
  0x51   :  { %493 = vmatpush.bf16.msrb.mxu0 %v695_v5 }
  0x52   :  { %505 = vmatpush.bf16.msrb.mxu1 %v711_v13 }
  0x55   :  { %494 = vmatpush.bf16.msrb.mxu0 %v683_v12 }
  0x56   :  { %506 = vmatpush.bf16.msrb.mxu1 %v699_v16 }
  0x58   :  { %495 = vmatmul.bf16.vlgmr.msrb.gmra.mxu0 %v1054_v22 }
  0x5a   :  { %507 = vmatpush.bf16.msrb.mxu1 %v687_v19 }
  0x5d   :  { %508 = vmatmul.bf16.vlgmr.msrb.gmra.mxu1 %v1054_v22  ;;  %v341_v22 = vperm.slane %v338_v24, 1 }
  0xb5   :  { %v275_v20 = vpop.f32.mrf.mxu0 }
  0xb6   :  { %v276_v29 = vadd.f32 %v275_v20, %v132_v27 }
  0xba   :  { %v288_v26 = vpop.f32.mrf.mxu1 }
  0xbb   :  { %v289_v37 = vadd.f32 %v288_v26, %v133_v35 }
  0xbc   :  { %v483_v21 = vpop.f32.mrf.mxu3 }
  0xbd   :  { %v277_v25 = vpop.f32.mrf.mxu0  ;;  %v484_v30 = vadd.f32 %v483_v21, %v340_v28 }
  0xbf   :  { %v513_v33 = vadd.f32 %v484_v30, %v276_v29 }
  0xc1   :  { %v772_v34 = vmul.f32 -1.442695, %v513_v33 }
  0xc2   :  { %v290_v32 = vpop.f32.mrf.mxu1 }
  0xc3   :  { %830 = vpow2.f32 %v772_v34 }
  0xc4   :  { %v485_v31 = vpop.f32.mrf.mxu3 }
  0xc8   :  { %v301_v36 = vpop.f32.mrf.mxu2 }
  0xc9   :  { %v831_v41 = vpop.eup %830  ;;  %v302_v2 = vadd.f32 %v301_v36, %v134_v60 }
  0xca   :  { %v521_v44 = vadd.f32 1.0, %v831_v41 }
  0xcc   :  { %vm528_vm4 = vweird.f32 %v521_v44  ;;  %v534_v6 = vand.u32 2147483648, %v521_v44  ;;  %v532_v7 = vand.u32 2147483647, %v521_v44 }
  0xce   :  { %v535_v10 = vor.u32 1.1754944e-38, %v534_v6  ;;  %vm533_vm7 = vcmp.eq.f32.partialorder %v532_v7, 8.507059e+37 }
  0xd0   :  { %v303_v42 = vpop.f32.mrf.mxu2 }
  0xd5   :  { %v496_v38 = vpop.f32.mrf.mxu0 }
  0xd6   :  { %v497_v39 = vadd.f32 %v496_v38, %v341_v22 }
  0xd8   :  { %v514_v40 = vadd.f32 %v497_v39, %v289_v37 }
  0xda   :  { %v773_v43 = vmul.f32 -1.442695, %v514_v40  ;;  %v509_v46 = vpop.f32.mrf.mxu1 }
  0xdb   :  { %v510_v62 = vadd.f32 %v509_v46, %v342_v55 }
  0xdc   :  { %832 = vpow2.f32 %v773_v43 }
  0xdd   :  { %v498_v45 = vpop.f32.mrf.mxu0  ;;  %834 = vrcp.f32 %v521_v44 }
  0xe2   :  { %v833_v47 = vpop.eup %832  ;;  %v511_v49 = vpop.f32.mrf.mxu1 }
  0xe3   :  { %v522_v48 = vadd.f32 1.0, %v833_v47  ;;  %v835_v50 = vpop.eup %834 }
  0xe4   :  { %v524_v51 = vmul.f32 %v835_v50, %v521_v44  ;;  %vm529_vm5 = vweird.f32 %v835_v50 }
  0xe5   :  { %836 = vrcp.f32 %v522_v48  ;;  %v549_v57 = vand.u32 2147483648, %v522_v48  ;;  %v547_v59 = vand.u32 2147483647, %v522_v48  ;;  %vm543_vm1 = vweird.f32 %v522_v48  ;;  %vm530_vm6 = vmor %vm528_vm4, %vm529_vm5 }
  0xe6   :  { %v525_v54 = vsub.f32 1.0, %v524_v51 }
  0xe7   :  { %v550_v0 = vor.u32 1.1754944e-38, %v549_v57  ;;  %vm548_vm3 = vcmp.eq.f32.partialorder %v547_v59, 8.507059e+37 }
  0xe8   :  { %v526_v61 = vmul.f32 %v835_v50, %v525_v54 }
  0xea   :  { %v527_v4 = vadd.f32 %v835_v50, %v526_v61 }
  0xeb   :  { %v837_v52 = vpop.eup %836 }
  0xec   :  { %v539_v53 = vmul.f32 %v837_v52, %v522_v48  ;;  %vm544_vm0 = vweird.f32 %v837_v52  ;;  %v531_v9 = vsel %vm530_vm6, %v835_v50, %v527_v4 }
  0xed   :  { %vm545_vm2 = vmor %vm543_vm1, %vm544_vm0  ;;  %v536_v12 = vsel %vm533_vm7, %v535_v10, %v531_v9 }
  0xee   :  { %v540_v56 = vsub.f32 1.0, %v539_v53  ;;  %v556_v13 = vsub.f32 1.0, %v536_v12  ;;  %v558_v16 = vmul.f32 %v536_v12, %v1050_v11 }
  0xf0   :  { %v541_v58 = vmul.f32 %v837_v52, %v540_v56 }
  0xf2   :  { %v542_v63 = vadd.f32 %v837_v52, %v541_v58 }
  0xf4   :  { %v546_v1 = vsel %vm545_vm2, %v837_v52, %v542_v63 }
  0xf5   :  { %v551_v3 = vsel %vm548_vm3, %v550_v0, %v546_v1 }
  0xf6   :  { %v553_v5 = vmul.f32 %v551_v3, %v510_v62 }
  0xf8   :  { %v554_v8 = vadd.f32 %v553_v5, %v302_v2 }
  0xfa   :  { %838 = vtanh.f32 %v554_v8 }
 0x100   :  { %v839_v14 = vpop.eup %838 }
 0x101   :  { %v557_v15 = vmul.f32 %v839_v14, %v556_v13 }
 0x103   :  { %v559_v17 = vadd.f32 %v558_v16, %v557_v15 }
 0x105   :  { %560 = vst [vmem:[#allocation11] sm:$0xff] %v559_v17 }
 0x106   :  { %571 = dma.vmem_to_hbm [thread:$0]  %s567_s21, 128, %s569_s24, [#allocation4]  }
 0x107   :  { %990 = dma.done.wait [#allocation4], 128  }
 0x108   :  { %991 = vsyncadd [#allocation4], 4294967168 }
 0x109   :  { %576 = vsyncpa [#allocation3], 1 }
 0x10a   :  { %577 = vsyncpa [#allocation6], 1 }
 0x10b   :  { %578 = vsyncpa [#allocation9], 1 }
 0x10c   :  { %579 = vsyncpa [#allocation4], 1 }

</bundles_post_ra>
